<compile_context>
chip_gen: v6e
topology: v6e:2x2x1
jax: 0.10.0
libtpu: 0.0.40
codegen_flags: <defaults>
</compile_context>

<pallas_src>
import jax
import jax.numpy as jnp
from jax.experimental import pallas as pl
from jax.experimental.pallas import tpu as pltpu

IN_FEATURES = 4
OUT_FEATURES = 8
SUBLANES = 8     # f32 sublane alignment for the packed param slab
LANES = 128      # lane-dense padding


def pack_params(w, b):
    """Pack PyTorch-layout weight (OUT, IN) and bias (OUT,) into one
    lane-dense (8, 128) f32 slab:
      rows 0..IN-1 : W^T rows (first OUT lanes), row IN : bias, rest zero.
    Done once, outside the hot path (includes the transpose)."""
    wb = jnp.zeros((SUBLANES, LANES), jnp.float32)
    wb = wb.at[:IN_FEATURES, :OUT_FEATURES].set(w.T.astype(jnp.float32))
    wb = wb.at[IN_FEATURES, :OUT_FEATURES].set(b.astype(jnp.float32))
    return wb


def linear_relu_kernel(x_ref, wb_ref, o_ref):
    # x_ref : SMEM (IN,)     f32 — input row as scalars (sreg->vreg broadcast)
    # wb_ref: VMEM (8, 128)  f32 — rows 0..3 = W^T rows, row 4 = bias
    # o_ref : VMEM (1, OUT)  f32 — final result, stored directly (masked vst)
    #
    # GUARD: keep this on the VPU — do NOT replace with jnp.dot / pl.dot.
    w0 = wb_ref[0:1, :]
    w1 = wb_ref[1:2, :]
    w2 = wb_ref[2:3, :]
    w3 = wb_ref[3:4, :]
    bias = wb_ref[IN_FEATURES:IN_FEATURES + 1, :]

    # Paired reduction (shorter dependency chain than a serial 4-step chain).
    acc01 = (bias + x_ref[0] * w0) + x_ref[1] * w1
    acc23 = x_ref[2] * w2 + x_ref[3] * w3
    acc = acc01 + acc23                      # (1, 128), padded lanes are zero

    o_ref[...] = jnp.maximum(acc[:, :OUT_FEATURES], 0.0)


@jax.jit
def linear_relu(x_row, wb_packed):
    """x_row: (1, IN) f32, wb_packed: (8, 128) f32 -> (1, OUT) f32."""
    x_flat = x_row.reshape(IN_FEATURES).astype(jnp.float32)
    return pl.pallas_call(
        linear_relu_kernel,
        out_shape=jax.ShapeDtypeStruct((1, OUT_FEATURES), jnp.float32),
        in_specs=[
            pl.BlockSpec(memory_space=pltpu.MemorySpace.SMEM),   # x scalars
            pl.BlockSpec(memory_space=pltpu.MemorySpace.VMEM),   # packed W^T+b
        ],
        out_specs=pl.BlockSpec(memory_space=pltpu.MemorySpace.VMEM),
        cost_estimate=pl.CostEstimate(
            flops=2 * IN_FEATURES * OUT_FEATURES + OUT_FEATURES,
            transcendentals=0,
            bytes_accessed=(IN_FEATURES                 # x (SMEM)
                            + SUBLANES * LANES          # packed W^T + bias
                            + OUT_FEATURES) * 4,        # output row
        ),
    )(x_flat, wb_packed)


if __name__ == "__main__":
    key = jax.random.PRNGKey(0)
    k_x, k_w, k_b = jax.random.split(key, 3)

    # Deterministic parameter init (synthetic; mimics nn.Linear(4, 8) shapes).
    w = jax.random.uniform(k_w, (OUT_FEATURES, IN_FEATURES), jnp.float32, -0.5, 0.5)
    b = jax.random.uniform(k_b, (OUT_FEATURES,), jnp.float32, -0.5, 0.5)

    # Example input consistent with the module: x2 = torch.randn(1, 4)
    x2 = jax.random.normal(k_x, (1, IN_FEATURES), jnp.float32)

    # Pack weight + bias once (transpose happens here, outside the hot path).
    wb_packed = pack_params(w, b)

    y = linear_relu(x2, wb_packed)
    y = jax.block_until_ready(y)

    # Reference check in plain JAX.
    y_ref = jnp.maximum(x2 @ w.T + b, 0.0)
    assert y.shape == (1, OUT_FEATURES)
    assert jnp.allclose(y, y_ref, atol=1e-5), "mismatch vs reference"

    print("KERNEL_OK")
</pallas_src>

<mosaic_0001>
module attributes {stable_mosaic.version = 11 : i64} {
  func.func @linear_relu_kernel(%arg0: memref<4xf32, #tpu.memory_space<smem>>, %arg1: memref<8x128xf32, #tpu.memory_space<vmem>>, %arg2: memref<1x8xf32, #tpu.memory_space<vmem>>) attributes {dimension_semantics = [], scalar_prefetch = 0 : i64, scratch_operands = 0 : i64, tpu.core_type = #tpu.core_type<tc>} {
    %c0 = arith.constant 0 : index
    %c0_0 = arith.constant 0 : index
    %0 = vector.load %arg1[%c0, %c0_0] : memref<8x128xf32, #tpu.memory_space<vmem>>, vector<1x128xf32>
    %c1 = arith.constant 1 : index
    %c0_1 = arith.constant 0 : index
    %1 = vector.load %arg1[%c1, %c0_1] : memref<8x128xf32, #tpu.memory_space<vmem>>, vector<1x128xf32>
    %c2 = arith.constant 2 : index
    %c0_2 = arith.constant 0 : index
    %2 = vector.load %arg1[%c2, %c0_2] : memref<8x128xf32, #tpu.memory_space<vmem>>, vector<1x128xf32>
    %c3 = arith.constant 3 : index
    %c0_3 = arith.constant 0 : index
    %3 = vector.load %arg1[%c3, %c0_3] : memref<8x128xf32, #tpu.memory_space<vmem>>, vector<1x128xf32>
    %c4 = arith.constant 4 : index
    %c0_4 = arith.constant 0 : index
    %4 = vector.load %arg1[%c4, %c0_4] : memref<8x128xf32, #tpu.memory_space<vmem>>, vector<1x128xf32>
    %c0_5 = arith.constant 0 : index
    %5 = memref.load %arg0[%c0_5] : memref<4xf32, #tpu.memory_space<smem>>
    %6 = vector.broadcast %5 : f32 to vector<1x128xf32>
    %7 = arith.mulf %6, %0 : vector<1x128xf32>
    %8 = arith.addf %4, %7 : vector<1x128xf32>
    %c1_6 = arith.constant 1 : index
    %9 = memref.load %arg0[%c1_6] : memref<4xf32, #tpu.memory_space<smem>>
    %10 = vector.broadcast %9 : f32 to vector<1x128xf32>
    %11 = arith.mulf %10, %1 : vector<1x128xf32>
    %12 = arith.addf %8, %11 : vector<1x128xf32>
    %c2_7 = arith.constant 2 : index
    %13 = memref.load %arg0[%c2_7] : memref<4xf32, #tpu.memory_space<smem>>
    %14 = vector.broadcast %13 : f32 to vector<1x128xf32>
    %15 = arith.mulf %14, %2 : vector<1x128xf32>
    %c3_8 = arith.constant 3 : index
    %16 = memref.load %arg0[%c3_8] : memref<4xf32, #tpu.memory_space<smem>>
    %17 = vector.broadcast %16 : f32 to vector<1x128xf32>
    %18 = arith.mulf %17, %3 : vector<1x128xf32>
    %19 = arith.addf %15, %18 : vector<1x128xf32>
    %20 = arith.addf %12, %19 : vector<1x128xf32>
    %21 = vector.extract_strided_slice %20 {offsets = [0, 0], sizes = [1, 8], strides = [1, 1]} : vector<1x128xf32> to vector<1x8xf32>
    %cst = arith.constant 0.000000e+00 : f32
    %22 = vector.broadcast %cst : f32 to vector<1x8xf32>
    %23 = arith.maximumf %21, %22 : vector<1x8xf32>
    %c0_9 = arith.constant 0 : index
    %c0_10 = arith.constant 0 : index
    %24 = vector.load %arg2[%c0_9, %c0_10] : memref<1x8xf32, #tpu.memory_space<vmem>>, vector<1x8xf32>
    tpu.vector_store %arg2[%c0_9, %c0_10], %23 {strides = array<i32>} : memref<1x8xf32, #tpu.memory_space<vmem>>, vector<1x8xf32>,
    return
  }
}

</mosaic_0001>

<bundles_post_ra>
// kernel: linear_relu.1
= control target key start
LH: loop header
LB: loop body
LE: loop exit
PB: predicated region body
PF: predicated region fallthrough
CT: control target
= control target key end

     0   :  { %7 = vsyncpa [#allocation5], 0  ;;  %s168_s0 = inlined_call_operand.vmem [shape: f32[4], index: 0, kind: input, shape index: {}]   ;;  %s169_s1 = inlined_call_operand.hbm [shape: f32[8,128], index: 1, kind: input, shape index: {}]   ;;  %s170_s2 = inlined_call_operand.hbm [shape: f32[1,8], index: 2, kind: output, shape index: {}]  }
   0x1   :  { %8 = vsyncpa [#allocation3], 0 }
   0x2   :  { %9 = vsyncpa [#allocation4], 0  ;;  %s16_s11 = sshll.u32 %s168_s0, 4  ;;  %s17_s11 = int_to_ptr.vmem [resolvable:$true] %s16_s11 }
   0x3   :  { %s83_s12 = scalar_lea.vmem %s17_s11, 16  ;;  %p88_p1 = scmp.lt.s32.totalorder %s17_s11, %s17_s11 }
   0x4   :  { %p84_p0 = scmp.ne.s32.totalorder %s17_s11, %s83_s12  ;;  %p89_p2 = scmp.lt.s32.totalorder %s83_s12, %s83_s12 }
   0x6   :  { %p90_p3 = por %p89_p2, %p88_p1 }
   0x8   :  { %p91_p4 = pnand %p90_p3, %p84_p0 }
   0xa   :  { %94 = shalt.err (!%p91_p4)
}
   0xb   :  { %s141_s13 = smov [#allocation2]   ;;  %s142_s14 = smov [#allocation6]  }
   0xc   :  { %19 = dma.vmem_to_smem %s17_s11, 16, %s141_s13, [#allocation5]  }
   0xd   :  { %s26_s15 = sshll.u32 %s142_s14, 4  ;;  %s27_s15 = int_to_ptr.vmem [resolvable:$true] %s26_s15 }
   0xe   :  { %s103_s16 = scalar_lea.vmem %s27_s15, 128  ;;  %p108_p6 = scmp.lt.s32.totalorder %s27_s15, %s27_s15 }
   0xf   :  { %p104_p5 = scmp.ne.s32.totalorder %s27_s15, %s103_s16  ;;  %p109_p7 = scmp.lt.s32.totalorder %s103_s16, %s103_s16 }
  0x11   :  { %p110_p8 = por %p109_p7, %p108_p6 }
  0x13   :  { %p111_p9 = pnand %p110_p8, %p104_p5 }
  0x15   :  { %114 = shalt.err (!%p111_p9)
}
  0x16   :  { %29 = dma.hbm_to_vmem [thread:$0]  %s169_s1, 128, %s27_s15, [#allocation3]  }
  0x17   :  { %135 = dma.done.wait [#allocation5], 16  }
  0x18   :  { %136 = vsyncadd [#allocation5], 4294967280 }
  0x19   :  { %137 = dma.done.wait [#allocation3], 128  }
  0x1a   :  { %138 = vsyncadd [#allocation3], 4294967168 }
  0x1b   :  { %36 = sfence }
  0x1c   :  { %s42_s18 = sld [smem:[#allocation2]]  ;;  %v37_v0 = vld [vmem:[#allocation6] sm:$0x1]  ;;  %v38_v1 = vld [vmem:[#allocation6 + $0x1] sm:$0x1]  ;;  %s143_s1 = smov [#allocation7]  }
  0x1d   :  { %s77_s19 = sld [smem:[#allocation2 + $0x1]]  ;;  %v39_v2 = vld [vmem:[#allocation6 + $0x2] sm:$0x1]  ;;  %v41_v3 = vld [vmem:[#allocation6 + $0x4] sm:$0x1]  ;;  %s67_s22 = sshll.u32 %s143_s1, 4  ;;  %s68_s22 = int_to_ptr.vmem [resolvable:$true] %s67_s22 }
  0x1e   :  { %s78_s20 = sld [smem:[#allocation2 + $0x2]]  ;;  %v40_v5 = vld [vmem:[#allocation6 + $0x3] sm:$0x1]  ;;  %vm59_vm0 = vcmask 57344   ;;  %s115_s23 = scalar_lea.vmem %s68_s22, 16 }
  0x1f   :  { %s79_s21 = sld [smem:[#allocation2 + $0x3]]  ;;  %p116_p10 = scmp.ne.s32.totalorder %s68_s22, %s115_s23 }
  0x20   :  { %s119_s24 = scalar_lea.vmem %s68_s22, 32  ;;  %p120_p11 = scmp.lt.s32.totalorder %s68_s22, %s68_s22 }
  0x21   :  { %p121_p12 = scmp.lt.s32.totalorder %s119_s24, %s115_s23 }
  0x22   :  { %v43_v4 = vstv %s42_s18 }
  0x23   :  { %v44_v6 = vmul.f32 %v43_v4, %v37_v0  ;;  %v47_v7 = vstv %s77_s19  ;;  %p122_p13 = por %p121_p12, %p120_p11 }
  0x24   :  { %v48_v8 = vmul.f32 %v47_v7, %v38_v1  ;;  %v51_v9 = vstv %s78_s20 }
  0x25   :  { %v45_v10 = vadd.f32 %v44_v6, %v41_v3  ;;  %v52_v11 = vmul.f32 %v51_v9, %v39_v2  ;;  %v54_v12 = vstv %s79_s21  ;;  %p123_p0 = pnand %p122_p13, %p116_p10 }
  0x26   :  { %v55_v13 = vmul.f32 %v54_v12, %v40_v5 }
  0x27   :  { %v49_v14 = vadd.f32 %v48_v8, %v45_v10 }
  0x28   :  { %v56_v15 = vadd.f32 %v55_v13, %v52_v11 }
  0x2a   :  { %v57_v16 = vadd.f32 %v56_v15, %v49_v14 }
  0x2c   :  { %v58_v17 = vmax.f32 %v57_v16, 0.0 }
  0x2e   :  { %60 = vst.msk [vmem:[#allocation7] sm:$0x1] %vm59_vm0, %v58_v17 }
  0x2f   :  { %126 = shalt.err (!%p123_p0)
}
  0x30   :  { %70 = dma.vmem_to_hbm [thread:$0]  %s68_s22, 16, %s170_s2, [#allocation4]  }
  0x31   :  { %139 = dma.done.wait [#allocation4], 16  }
  0x32   :  { %140 = vsyncadd [#allocation4], 4294967280 }
  0x33   :  { %74 = vsyncpa [#allocation3], 1 }
  0x34   :  { %75 = vsyncpa [#allocation4], 1 }
  0x35   :  { %76 = vsyncpa [#allocation5], 1 }

</bundles_post_ra>
